<compile_context>
chip_gen: v7x
topology: tpu7x:2x2x1
jax: 0.10.0
libtpu: 0.0.40
codegen_flags: <defaults>
</compile_context>

<pallas_src>
import jax
import jax.numpy as jnp
from jax.experimental import pallas as pl
from jax.experimental.pallas import tpu as pltpu


def _round_up(a: int, b: int) -> int:
    return (a + b - 1) // b * b


# ----------------------------------------------------------------------------
# One-shot binarize kernel (runs once at init in a deployed model).
# ----------------------------------------------------------------------------
def _binarize_kernel(t_ref, o_ref):
    # sign(masked_fill(t, t==0, eps)): negatives -> -1, zeros/positives -> +1.
    o_ref[...] = jnp.where(t_ref[...] < 0, -1.0, 1.0).astype(o_ref.dtype)


def binarize_2d(t, out_dtype, bm, bn):
    """Elementwise binarize of a (R, C) array, tiled (bm, bn); R%bm==C%bn==0."""
    R, C = t.shape
    return pl.pallas_call(
        _binarize_kernel,
        out_shape=jax.ShapeDtypeStruct((R, C), out_dtype),
        grid_spec=pltpu.PrefetchScalarGridSpec(
            num_scalar_prefetch=0,
            grid=(R // bm, C // bn),
            in_specs=[pl.BlockSpec((bm, bn), lambda i, j: (i, j))],
            out_specs=pl.BlockSpec((bm, bn), lambda i, j: (i, j)),
        ),
        compiler_params=pltpu.CompilerParams(
            dimension_semantics=("parallel", "parallel"),
        ),
    )(t)


# ----------------------------------------------------------------------------
# Main tiled matmul kernel: out = x @ W_bin.T + b_bin
# ----------------------------------------------------------------------------
def binary_matmul_kernel(x_ref, w_ref, b_ref, o_ref, acc_ref):
    k = pl.program_id(2)

    @pl.when(k == 0)
    def _init():
        acc_ref[...] = jnp.zeros_like(acc_ref)

    # x tile (tm, tk) bf16, W_bin tile (tn, tk) bf16 +/-1: contract K directly
    # (no in-kernel transpose), f32 accumulation on the MXU.
    acc_ref[...] += jax.lax.dot_general(
        x_ref[...], w_ref[...],
        dimension_numbers=(((1,), (1,)), ((), ())),
        preferred_element_type=jnp.float32,
    )

    # Finalize once per (i, j) output tile: add the +/-1 bias, cast once.
    @pl.when(k == pl.num_programs(2) - 1)
    def _finalize():
        o_ref[...] = (acc_ref[...] + b_ref[...]).astype(o_ref.dtype)


def _choose_tiles(B, N, K):
    tm = min(_round_up(B, 8), 256)
    tn = min(_round_up(N, 128), 512)
    tk = min(_round_up(K, 128), 512)
    # v7x has 2 TensorCores: if both parallel grid axes (M, N) collapse to a
    # single block (small-batch inference), halve tn so both cores get work.
    m_blocks = _round_up(B, tm) // tm
    n_blocks = _round_up(N, tn) // tn
    if m_blocks == 1 and n_blocks == 1 and N > 128:
        tn = _round_up(pl.cdiv(N, 2), 128)
    return tm, tn, tk


def prepare_binary_params(weight, bias, tn, tk):
    """One-shot prep: pad W/bias to tile multiples and binarize.

    W becomes a persistent bf16 +/-1 copy (half the HBM bytes of raw f32),
    bias becomes a (1, Np) f32 +/-1 row. Padded W cells binarize to +1 but only
    ever multiply zero-padded x columns (K padding) or are sliced off the
    output (N padding), so they contribute nothing.
    """
    N, K = weight.shape
    Np, Kp = _round_up(N, tn), _round_up(K, tk)
    if (Np, Kp) != (N, K):
        weight = jnp.pad(weight, ((0, Np - N), (0, Kp - K)))
    w_bin = binarize_2d(weight, jnp.bfloat16, tn, tk)

    bias2d = bias.reshape(1, N)
    if Np != N:
        bias2d = jnp.pad(bias2d, ((0, 0), (0, Np - N)))
    b_bin = binarize_2d(bias2d, jnp.float32, 1, tn)
    return w_bin, b_bin


def binary_linear_matmul(x, w_bin, b_bin, tm, tn, tk, out_dtype):
    """Hot path: x (B, K) vs pre-binarized w_bin (Np, Kp), b_bin (1, Np)."""
    B, K = x.shape
    Np, Kp = w_bin.shape

    x = x.astype(jnp.bfloat16)              # halve x DMA bytes
    Bp = _round_up(B, tm)
    if (Bp, Kp) != (B, K):
        x = jnp.pad(x, ((0, Bp - B), (0, Kp - K)))

    grid = (Bp // tm, Np // tn, Kp // tk)
    out = pl.pallas_call(
        binary_matmul_kernel,
        out_shape=jax.ShapeDtypeStruct((Bp, Np), out_dtype),
        grid_spec=pltpu.PrefetchScalarGridSpec(
            num_scalar_prefetch=0,
            grid=grid,
            in_specs=[
                pl.BlockSpec((tm, tk), lambda i, j, k: (i, k)),   # x (bf16)
                pl.BlockSpec((tn, tk), lambda i, j, k: (j, k)),   # W_bin (bf16 +/-1)
                pl.BlockSpec((1, tn), lambda i, j, k: (0, j)),    # bias (f32 +/-1)
            ],
            out_specs=pl.BlockSpec((tm, tn), lambda i, j, k: (i, j)),
            scratch_shapes=[pltpu.VMEM((tm, tn), jnp.float32)],
        ),
        compiler_params=pltpu.CompilerParams(
            dimension_semantics=("parallel", "parallel", "arbitrary"),
            vmem_limit_bytes=48 * 1024 * 1024,   # > scoped defaults, < v7x 64 MiB
        ),
    )(x, w_bin, b_bin)
    return out[:B, :]


def binary_linear(x, weight, bias):
    """Forward of BinaryLinear: F.linear(x, binarize(W), binarize(b))."""
    B, K = x.shape
    N, K2 = weight.shape
    assert K == K2 and bias.shape == (N,)
    tm, tn, tk = _choose_tiles(B, N, K)
    # TODO(synk): in a deployed model, run prepare_binary_params once at init
    # and reuse w_bin / b_bin across calls; it is re-run per call here only to
    # keep this script self-contained.
    w_bin, b_bin = prepare_binary_params(weight, bias, tn, tk)
    out = binary_linear_matmul(x, w_bin, b_bin, tm, tn, tk, x.dtype)
    return out[:, :N]


def binary_linear_reference(x, weight, bias):
    """Plain-JAX reference with the same binarize + bf16-operand semantics."""
    w_bin = jnp.where(weight < 0, -1.0, 1.0).astype(jnp.bfloat16)
    b_bin = jnp.where(bias < 0, -1.0, 1.0).astype(jnp.float32)
    acc = jax.lax.dot_general(
        x.astype(jnp.bfloat16), w_bin,
        dimension_numbers=(((1,), (1,)), ((), ())),
        preferred_element_type=jnp.float32,
    )
    return (acc + b_bin).astype(x.dtype)


if __name__ == "__main__":
    keys = jax.random.split(jax.random.PRNGKey(0), 6)

    # Case 1: tile-aligned shapes, small batch -> grid (1, 2, 1); exercises the
    # accumulator init/finalize and the tn-halving megacore heuristic.
    in_f, out_f, batch = 512, 512, 2
    weight = jnp.sign(jax.random.normal(keys[0], (out_f, in_f), jnp.float32))
    bias = jnp.sign(jax.random.normal(keys[1], (out_f,), jnp.float32))
    x = jax.random.normal(keys[2], (batch, in_f), jnp.float32)

    out = binary_linear(x, weight, bias)
    jax.block_until_ready(out)
    ref = binary_linear_reference(x, weight, bias)
    assert out.shape == (batch, out_f)
    assert jnp.allclose(out, ref, atol=1e-2, rtol=1e-3), "mismatch (aligned case)"

    # Case 2: ragged shapes -> exercises the padding paths (W/bias in prep,
    # x in the hot path).
    in_f2, out_f2, batch2 = 200, 100, 3
    weight2 = jnp.sign(jax.random.normal(keys[3], (out_f2, in_f2), jnp.float32))
    bias2 = jnp.sign(jax.random.normal(keys[4], (out_f2,), jnp.float32))
    x2 = jax.random.normal(keys[5], (batch2, in_f2), jnp.float32)

    out2 = binary_linear(x2, weight2, bias2)
    jax.block_until_ready(out2)
    ref2 = binary_linear_reference(x2, weight2, bias2)
    assert out2.shape == (batch2, out_f2)
    assert jnp.allclose(out2, ref2, atol=1e-2, rtol=1e-3), "mismatch (ragged case)"

    print("KERNEL_OK")
</pallas_src>

<mosaic_0001>
module attributes {stable_mosaic.version = 11 : i64} {
  func.func @_binarize_kernel(%arg0: i32, %arg1: i32, %arg2: memref<256x512xf32, #tpu.memory_space<vmem>>, %arg3: memref<256x512xbf16, #tpu.memory_space<vmem>>) attributes {dimension_semantics = [#tpu.dimension_semantics<parallel>, #tpu.dimension_semantics<parallel>], iteration_bounds = array<i64: 2, 1>, scalar_prefetch = 0 : i64, scratch_operands = 0 : i64, tpu.core_type = #tpu.core_type<tc>, window_params = [{transform_indices = @transform_0, window_bounds = array<i64: 256, 512>}, {transform_indices = @transform_1, window_bounds = array<i64: 256, 512>}]} {
    %c0 = arith.constant 0 : index
    %c0_0 = arith.constant 0 : index
    %0 = vector.load %arg2[%c0, %c0_0] : memref<256x512xf32, #tpu.memory_space<vmem>>, vector<256x512xf32>
    %cst = arith.constant 0.000000e+00 : f32
    %1 = vector.broadcast %cst : f32 to vector<256x512xf32>
    %2 = arith.cmpf olt, %0, %1 : vector<256x512xf32>
    %cst_1 = arith.constant -1.000000e+00 : f32
    %cst_2 = arith.constant 1.000000e+00 : f32
    %3 = vector.broadcast %cst_1 : f32 to vector<256x512xf32>
    %4 = vector.broadcast %cst_2 : f32 to vector<256x512xf32>
    %5 = arith.select %2, %3, %4 : vector<256x512xi1>, vector<256x512xf32>
    %6 = arith.truncf %5 : vector<256x512xf32> to vector<256x512xbf16>
    %c0_3 = arith.constant 0 : index
    %c0_4 = arith.constant 0 : index
    %7 = vector.load %arg3[%c0_3, %c0_4] : memref<256x512xbf16, #tpu.memory_space<vmem>>, vector<256x512xbf16>
    tpu.vector_store %arg3[%c0_3, %c0_4], %6 {strides = array<i32>} : memref<256x512xbf16, #tpu.memory_space<vmem>>, vector<256x512xbf16>,
    return
  }
  func.func @transform_0(%arg0: i32, %arg1: i32) -> (i32, i32) {
    %c0_i32 = arith.constant 0 : i32
    return %arg0, %arg1 : i32, i32
  }
  func.func @transform_1(%arg0: i32, %arg1: i32) -> (i32, i32) {
    %c0_i32 = arith.constant 0 : i32
    return %arg0, %arg1 : i32, i32
  }
}

</mosaic_0001>

<bundles_post_ra>
// kernel: tpu_custom_call.1
= control target key start
LH: loop header
LB: loop body
LE: loop exit
PB: predicated region body
PF: predicated region fallthrough
CT: control target
= control target key end

     0   :  { %6 = vsyncpa [#allocation3], 0  ;;  %s1942_s0 = inlined_call_operand.hbm [shape: f32[512,512], index: 0, kind: input, shape index: {}]   ;;  %s1943_s1 = inlined_call_operand.hbm [shape: bf16[512,512], index: 1, kind: output, shape index: {}]  }
   0x1   :  { %8 = vsyncpa [#allocation3 + $0x1], 0 }
   0x2   :  { %9 = vsyncpa [#allocation4], 0 }
   0x3   :  { %11 = vsyncpa [#allocation4 + $0x1], 0  ;;  %s1441_s6 = smov 0   ;;  %s1443_s7 = smov 0  }
   0x4   :  { %s1445_s8 = smov 0   ;;  %s1447_s9 = smov 0  }
   0x5   :  { %s1449_s10 = smov 0   ;;  %s1451_s11 = smov 0  }
   0x6 LB: > { %s1094_s12 = sadd.s32 4294967295, %s1422_s11   ;;  %s1095_s13 = sadd.s32 4294967294, %s1422_s11   ;;  %s1422_s11 = sphi %s1451_s11, %s17_s11   ;;  %s1418_s10 = sphi %s1449_s10, %s1958_s10   ;;  %s1414_s9 = sphi %s1447_s9, %s1957_s9   ;;  %s1410_s8 = sphi %s1445_s8, %s1956_s8   ;;  %s1406_s7 = sphi %s1443_s7, %s1955_s7   ;;  %s1402_s6 = sphi %s1441_s6, %s1954_s6  }
   0x7   : > { %s29_s14 = sadd.s32 1, %s1418_s10  ;;  %s38_s15 = sadd.s32 1, %s1410_s8 }
   0x8   : > { %p31_p0 = scmp.ge.s32.totalorder %s29_s14, 2  ;;  %p45_p1 = scmp.ne.s32.totalorder %s1410_s8, %s1406_s7 }
   0x9   : > { %p46_p2 = scmp.eq.s32.totalorder %s1422_s11, 0  ;;  %p51_p3 = scmp.ne.s32.totalorder %s1406_s7, %s1402_s6 }
   0xa   : > { %s1960_s14 = smov (%p31_p0, %s29_s14), 0  ;;  %p52_p5 = scmp.eq.s32.totalorder %s1094_s12, 0 }
   0xb   : > { %p1482_p4 = por %p46_p2, %p45_p1  ;;  %s33_s17 = ssub.s32 %s1418_s10, %s1960_s14 }
   0xc   : > { %p77_p6 = scmp.eq.s32.totalorder %s1094_s12, 1  ;;  %p36_p7 = scmp.eq.s32.totalorder %s33_s17, 0 }
   0xd   : > { %p1488_p8 = por %p52_p5, %p51_p3  ;;  %p83_p10 = scmp.eq.s32.totalorder %s1095_s13, 1 }
   0xe   : > { %p1492_p9 = por %p77_p6, %p45_p1  ;;  %p1255_p13 = scmp.lt.s32.totalorder %s1422_s11, 2 }
   0xf   : > { %s1497_s20 = scalar_select %p36_p7, %s1410_s8, %s38_s15  }
  0x10   : > { %s1947_s19 = scalar_select %p1492_p9, 1, 0 }
  0x11   : > { %p1499_p11 = por %p83_p10, %p51_p3  ;;  %s103_s22 = sand.u32 1, %s1410_s8  }
  0x12   : > { %s1098_s23 = sshll.u32 %s103_s22, 10  ;;  %s1176_s24 = sshll.u32 %s1418_s10, 14 }
  0x13   : > { %s1948_s21 = scalar_select %p1499_p11, 1, 0 }
  0x14   : > { %s1510_s27 = scalar_lea.hbm %s1942_s0, %s1176_s24  ;;  %s107_s28 = scalar_lea.vmem [#allocation2], %s1098_s23 }
  0x15   : > { %s117_s29 = sshll.u32 %s107_s28, 4  ;;  %p1516_p0 = pnand %p1255_p13, %p1482_p4  ;;  %s1512_s29 = int_to_ptr.vmem [resolvable:$true] %s117_s29 }
  0x16   : > { %s1521_s2 = scalar_lea.sflag [#allocation3], %s103_s22  ;;  %s1310_s3 = scalar_lea.hbm %s1510_s27, 16384 }
  0x17   : > { %p1311_p2 = scmp.ne.s32.totalorder %s1510_s27, %s1310_s3  ;;  %p1312_p3 = pneg %p1516_p0 }
  0x18   : > { %s1315_s12 = scalar_lea.hbm %s1942_s0, 32768  ;;  %p1316_p4 = scmp.lt.u32.totalorder %s1510_s27, %s1942_s0 }
  0x19   : > { %p1313_p5 = pnand %p1312_p3, %p1311_p2  ;;  %p1317_p7 = scmp.lt.u32.totalorder %s1315_s12, %s1310_s3 }
  0x1a   : > { %p1319_p13 = scmp.lt.u32.totalorder %s1310_s3, %s1510_s27 }
  0x1b   : > { %p1314_p6 = pneg %p1313_p5  ;;  %p1318_p10 = por %p1317_p7, %p1316_p4 }
  0x1d   : > { %p1320_p12 = por %p1319_p13, %p1318_p10 }
  0x1f   : > { %p1321_p1 = pnand %p1320_p12, %p1314_p6 }
  0x21   : > { %1324 = shalt.err (!%p1321_p1)
}
  0x22   : > { %s1325_s16 = scalar_lea.vmem %s1512_s29, 16384  ;;  %s1424_s17 = smov [#allocation2]  }
  0x23   : > { %p1326_p2 = scmp.ne.s32.totalorder %s1512_s29, %s1325_s16  ;;  %s1330_s22 = sshll.u32 %s1424_s17, 4  ;;  %s1331_s22 = int_to_ptr.vmem [resolvable:$false] %s1330_s22 }
  0x24   : > { %s1332_s23 = scalar_lea.vmem %s1331_s22, 32768  ;;  %p1333_p9 = scmp.lt.s32.totalorder %s1512_s29, %s1331_s22 }
  0x25   : > { %p1328_p5 = pnand %p1326_p2, %p1312_p3  ;;  %p1334_p4 = scmp.lt.s32.totalorder %s1332_s23, %s1325_s16 }
  0x27   : > { %p1329_p11 = pneg %p1328_p5  ;;  %p1335_p7 = por %p1334_p4, %p1333_p9 }
  0x29   : > { %p1336_p10 = pnand %p1335_p7, %p1329_p11 }
  0x2b   : > { %1339 = shalt.err (!%p1336_p10)
}
  0x2c   : > { %s1425_s24 = smov 512   ;;  %s1426_s25 = smov 32  }
  0x2d   : > { %1250 = dma.hbm_to_vmem [thread:$0]  (!%p1516_p0), %s1510_s27, 16384, %s1512_s29, %s1521_s2, %s1425_s24, %s1425_s24, %s1426_s25  }
  0x2e   : > { %p125_p12 = scmp.lt.s32.totalorder %s1422_s11, 3  ;;  %p1950_p1 = scmp.ge.s32.totalorder %s1422_s11, 1 }
  0x30   : > { %p126_p3 = pnand %p1950_p1, %p125_p12 }
  0x31   : > { %s1553_s26 = sand.u32 (!%p126_p3), 1, %s1406_s7  }
  0x32   : > { %129 = sbr.rel (%p126_p3) target bundleno = 157 (0x9d), region = 24  ;;  %s1103_s28 = sshll.u32 (!%p126_p3), %s1553_s26, 10 }
  0x33   : > { %s132_s3 = scalar_lea.sflag (!%p126_p3), [#allocation3], %s1553_s26  ;;  %s1557_s4 = scalar_lea.vmem (!%p126_p3), [#allocation2], %s1103_s28 }
  0x39   : > { %1393 = dma.done.wait (%p1488_p8), %s132_s3, 16384  }
  0x3a   : > { %1395 = vsyncadd (%p1488_p8), %s132_s3, 4294950912  ;;  %s1104_s27 = sshll.u32 %s1553_s26, 9  ;;  %v158_v0 = vld [vmem:[%s1557_s4] sm:$0xff]  ;;  %v159_v1 = vld [vmem:[%s1557_s4 + $0x8] sm:$0xff]  ;;  %v1427_v6 = vmov 1.0   ;;  %s1242_s29 = sshll.u32 %s1414_s9, 13 }
  0x3b   : > { %v160_v2 = vld [vmem:[%s1557_s4 + $0x10] sm:$0xff]  ;;  %vm286_vm0 = vcmp.lt.f32.partialorder %v158_v0, 0.0  ;;  %vm287_vm1 = vcmp.lt.f32.partialorder %v159_v1, 0.0  ;;  %v161_v3 = vld [vmem:[%s1557_s4 + $0x18] sm:$0xff]  ;;  %v162_v4 = vld [vmem:[%s1557_s4 + $0x20] sm:$0xff]  ;;  %s1582_s18 = scalar_lea.vmem [#allocation5], %s1104_s27  ;;  %s1889_s5 = scalar_lea.hbm %s1943_s1, %s1242_s29 }
  0x3c   : > { %vm288_vm2 = vcmp.lt.f32.partialorder %v160_v2, 0.0  ;;  %v163_v5 = vld [vmem:[%s1557_s4 + $0x28] sm:$0xff]  ;;  %v414_v7 = vsel %vm286_vm0, -1.0, %v1427_v6  ;;  %v415_v8 = vsel %vm287_vm1, -1.0, %v1427_v6  ;;  %vm289_vm3 = vcmp.lt.f32.partialorder %v161_v3, 0.0  ;;  %v164_v10 = vld [vmem:[%s1557_s4 + $0x30] sm:$0xff] }
  0x3d   : > { %v416_v9 = vsel %vm288_vm2, -1.0, %v1427_v6  ;;  %v165_v11 = vld [vmem:[%s1557_s4 + $0x38] sm:$0xff]  ;;  %v1177_v12 = vpack.c.bf16 %v415_v8, %v414_v7  ;;  %v417_v13 = vsel %vm289_vm3, -1.0, %v1427_v6  ;;  %vm290_vm4 = vcmp.lt.f32.partialorder %v162_v4, 0.0  ;;  %v166_v14 = vld [vmem:[%s1557_s4 + $0x40] sm:$0xff]  ;;  %v167_v15 = vld [vmem:[%s1557_s4 + $0x48] sm:$0xff] }
  0x3e   : > { %vm291_vm5 = vcmp.lt.f32.partialorder %v163_v5, 0.0  ;;  %v168_v16 = vld [vmem:[%s1557_s4 + $0x50] sm:$0xff]  ;;  %v1178_v17 = vpack.c.bf16 %v417_v13, %v416_v9  ;;  %v418_v18 = vsel %vm290_vm4, -1.0, %v1427_v6  ;;  %vm292_vm6 = vcmp.lt.f32.partialorder %v164_v10, 0.0  ;;  %v169_v20 = vld [vmem:[%s1557_s4 + $0x58] sm:$0xff]  ;;  %v170_v23 = vld [vmem:[%s1557_s4 + $0x60] sm:$0xff] }
  0x3f   : > { %v419_v19 = vsel %vm291_vm5, -1.0, %v1427_v6  ;;  %926 = vst [vmem:[%s1582_s18] sm:$0xff] %v1177_v12  ;;  %vm293_vm7 = vcmp.lt.f32.partialorder %v165_v11, 0.0  ;;  %v420_v22 = vsel %vm292_vm6, -1.0, %v1427_v6  ;;  %vm294_vm8 = vcmp.lt.f32.partialorder %v166_v14, 0.0  ;;  %v171_v24 = vld [vmem:[%s1557_s4 + $0x68] sm:$0xff]  ;;  %v172_v27 = vld [vmem:[%s1557_s4 + $0x70] sm:$0xff] }
  0x40   : > { %v1179_v21 = vpack.c.bf16 %v419_v19, %v418_v18  ;;  %927 = vst [vmem:[%s1582_s18 + $0x8] sm:$0xff] %v1178_v17  ;;  %v421_v25 = vsel %vm293_vm7, -1.0, %v1427_v6  ;;  %vm295_vm9 = vcmp.lt.f32.partialorder %v167_v15, 0.0  ;;  %v422_v26 = vsel %vm294_vm8, -1.0, %v1427_v6  ;;  %v173_v31 = vld [vmem:[%s1557_s4 + $0x78] sm:$0xff]  ;;  %v174_v32 = vld [vmem:[%s1557_s4 + $0x80] sm:$0xff] }
  0x41   : > { %vm296_vm10 = vcmp.lt.f32.partialorder %v168_v16, 0.0  ;;  %v1180_v28 = vpack.c.bf16 %v421_v25, %v420_v22  ;;  %v423_v29 = vsel %vm295_vm9, -1.0, %v1427_v6  ;;  %vm297_vm11 = vcmp.lt.f32.partialorder %v169_v20, 0.0  ;;  %v175_v35 = vld [vmem:[%s1557_s4 + $0x88] sm:$0xff]  ;;  %v176_v36 = vld [vmem:[%s1557_s4 + $0x90] sm:$0xff]  ;;  %v177_v40 = vld [vmem:[%s1557_s4 + $0x98] sm:$0xff] }
  0x42   : > { %928 = vst [vmem:[%s1582_s18 + $0x10] sm:$0xff] %v1179_v21  ;;  %v424_v30 = vsel %vm296_vm10, -1.0, %v1427_v6  ;;  %v1181_v33 = vpack.c.bf16 %v423_v29, %v422_v26  ;;  %v425_v34 = vsel %vm297_vm11, -1.0, %v1427_v6  ;;  %vm298_vm12 = vcmp.lt.f32.partialorder %v170_v23, 0.0  ;;  %v178_v43 = vld [vmem:[%s1557_s4 + $0xa0] sm:$0xff]  ;;  %v179_v44 = vld [vmem:[%s1557_s4 + $0xa8] sm:$0xff] }
  0x43   : > { %vm299_vm13 = vcmp.lt.f32.partialorder %v171_v24, 0.0  ;;  %929 = vst [vmem:[%s1582_s18 + $0x18] sm:$0xff] %v1180_v28  ;;  %v1182_v37 = vpack.c.bf16 %v425_v34, %v424_v30  ;;  %v426_v38 = vsel %vm298_vm12, -1.0, %v1427_v6  ;;  %vm300_vm14 = vcmp.lt.f32.partialorder %v172_v27, 0.0  ;;  %v180_v47 = vld [vmem:[%s1557_s4 + $0xb0] sm:$0xff]  ;;  %v181_v51 = vld [vmem:[%s1557_s4 + $0xb8] sm:$0xff] }
  0x44   : > { %v427_v39 = vsel %vm299_vm13, -1.0, %v1427_v6  ;;  %930 = vst [vmem:[%s1582_s18 + $0x20] sm:$0xff] %v1181_v33  ;;  %vm301_vm15 = vcmp.lt.f32.partialorder %v173_v31, 0.0  ;;  %v428_v42 = vsel %vm300_vm14, -1.0, %v1427_v6  ;;  %vm302_vm0 = vcmp.lt.f32.partialorder %v174_v32, 0.0  ;;  %v182_v52 = vld [vmem:[%s1557_s4 + $0xc0] sm:$0xff] }
  0x45   : > { %v1183_v41 = vpack.c.bf16 %v427_v39, %v426_v38  ;;  %931 = vst [vmem:[%s1582_s18 + $0x28] sm:$0xff] %v1182_v37  ;;  %v429_v45 = vsel %vm301_vm15, -1.0, %v1427_v6  ;;  %vm303_vm1 = vcmp.lt.f32.partialorder %v175_v35, 0.0  ;;  %v430_v46 = vsel %vm302_vm0, -1.0, %v1427_v6  ;;  %v183_v55 = vld [vmem:[%s1557_s4 + $0xc8] sm:$0xff]  ;;  %v184_v56 = vld [vmem:[%s1557_s4 + $0xd0] sm:$0xff] }
  0x46   : > { %vm304_vm2 = vcmp.lt.f32.partialorder %v176_v36, 0.0  ;;  %v1184_v48 = vpack.c.bf16 %v429_v45, %v428_v42  ;;  %v431_v49 = vsel %vm303_vm1, -1.0, %v1427_v6  ;;  %vm305_vm3 = vcmp.lt.f32.partialorder %v177_v40, 0.0  ;;  %v185_v60 = vld [vmem:[%s1557_s4 + $0xd8] sm:$0xff]  ;;  %v186_v63 = vld [vmem:[%s1557_s4 + $0xe0] sm:$0xff]  ;;  %v187_v0 = vld [vmem:[%s1557_s4 + $0xe8] sm:$0xff] }
  0x47   : > { %932 = vst [vmem:[%s1582_s18 + $0x30] sm:$0xff] %v1183_v41  ;;  %v432_v50 = vsel %vm304_vm2, -1.0, %v1427_v6  ;;  %v1185_v53 = vpack.c.bf16 %v431_v49, %v430_v46  ;;  %v433_v54 = vsel %vm305_vm3, -1.0, %v1427_v6  ;;  %vm306_vm4 = vcmp.lt.f32.partialorder %v178_v43, 0.0  ;;  %v188_v3 = vld [vmem:[%s1557_s4 + $0xf0] sm:$0xff]  ;;  %v189_v8 = vld [vmem:[%s1557_s4 + $0xf8] sm:$0xff] }
  0x48   : > { %vm307_vm5 = vcmp.lt.f32.partialorder %v179_v44, 0.0  ;;  %933 = vst [vmem:[%s1582_s18 + $0x38] sm:$0xff] %v1184_v48  ;;  %v1186_v57 = vpack.c.bf16 %v433_v54, %v432_v50  ;;  %v434_v58 = vsel %vm306_vm4, -1.0, %v1427_v6  ;;  %vm308_vm6 = vcmp.lt.f32.partialorder %v180_v47, 0.0  ;;  %v190_v9 = vld [vmem:[%s1557_s4 + $0x100] sm:$0xff]  ;;  %v191_v12 = vld [vmem:[%s1557_s4 + $0x108] sm:$0xff] }
  0x49   : > { %v435_v59 = vsel %vm307_vm5, -1.0, %v1427_v6  ;;  %934 = vst [vmem:[%s1582_s18 + $0x40] sm:$0xff] %v1185_v53  ;;  %vm309_vm7 = vcmp.lt.f32.partialorder %v181_v51, 0.0  ;;  %v436_v62 = vsel %vm308_vm6, -1.0, %v1427_v6  ;;  %vm310_vm8 = vcmp.lt.f32.partialorder %v182_v52, 0.0  ;;  %v192_v13 = vld [vmem:[%s1557_s4 + $0x110] sm:$0xff] }
  0x4a   : > { %v1187_v61 = vpack.c.bf16 %v435_v59, %v434_v58  ;;  %935 = vst [vmem:[%s1582_s18 + $0x48] sm:$0xff] %v1186_v57  ;;  %v437_v1 = vsel %vm309_vm7, -1.0, %v1427_v6  ;;  %vm311_vm9 = vcmp.lt.f32.partialorder %v183_v55, 0.0  ;;  %v438_v2 = vsel %vm310_vm8, -1.0, %v1427_v6  ;;  %v193_v17 = vld [vmem:[%s1557_s4 + $0x118] sm:$0xff]  ;;  %v194_v20 = vld [vmem:[%s1557_s4 + $0x120] sm:$0xff] }
  0x4b   : > { %vm312_vm10 = vcmp.lt.f32.partialorder %v184_v56, 0.0  ;;  %v1188_v4 = vpack.c.bf16 %v437_v1, %v436_v62  ;;  %v439_v5 = vsel %vm311_vm9, -1.0, %v1427_v6  ;;  %vm313_vm11 = vcmp.lt.f32.partialorder %v185_v60, 0.0  ;;  %v195_v21 = vld [vmem:[%s1557_s4 + $0x128] sm:$0xff]  ;;  %v196_v24 = vld [vmem:[%s1557_s4 + $0x130] sm:$0xff]  ;;  %v197_v28 = vld [vmem:[%s1557_s4 + $0x138] sm:$0xff] }
  0x4c   : > { %936 = vst [vmem:[%s1582_s18 + $0x50] sm:$0xff] %v1187_v61  ;;  %v440_v7 = vsel %vm312_vm10, -1.0, %v1427_v6  ;;  %v1189_v10 = vpack.c.bf16 %v439_v5, %v438_v2  ;;  %v441_v11 = vsel %vm313_vm11, -1.0, %v1427_v6  ;;  %vm314_vm12 = vcmp.lt.f32.partialorder %v186_v63, 0.0  ;;  %v198_v29 = vld [vmem:[%s1557_s4 + $0x140] sm:$0xff]  ;;  %v199_v32 = vld [vmem:[%s1557_s4 + $0x148] sm:$0xff] }
  0x4d   : > { %vm315_vm13 = vcmp.lt.f32.partialorder %v187_v0, 0.0  ;;  %937 = vst [vmem:[%s1582_s18 + $0x58] sm:$0xff] %v1188_v4  ;;  %v1190_v14 = vpack.c.bf16 %v441_v11, %v440_v7  ;;  %v442_v15 = vsel %vm314_vm12, -1.0, %v1427_v6  ;;  %vm316_vm14 = vcmp.lt.f32.partialorder %v188_v3, 0.0  ;;  %v200_v33 = vld [vmem:[%s1557_s4 + $0x150] sm:$0xff]  ;;  %v201_v37 = vld [vmem:[%s1557_s4 + $0x158] sm:$0xff] }
  0x4e   : > { %v443_v16 = vsel %vm315_vm13, -1.0, %v1427_v6  ;;  %938 = vst [vmem:[%s1582_s18 + $0x60] sm:$0xff] %v1189_v10  ;;  %vm317_vm15 = vcmp.lt.f32.partialorder %v189_v8, 0.0  ;;  %v444_v19 = vsel %vm316_vm14, -1.0, %v1427_v6  ;;  %vm318_vm0 = vcmp.lt.f32.partialorder %v190_v9, 0.0  ;;  %v202_v40 = vld [vmem:[%s1557_s4 + $0x160] sm:$0xff] }
  0x4f   : > { %v1191_v18 = vpack.c.bf16 %v443_v16, %v442_v15  ;;  %939 = vst [vmem:[%s1582_s18 + $0x68] sm:$0xff] %v1190_v14  ;;  %v445_v22 = vsel %vm317_vm15, -1.0, %v1427_v6  ;;  %vm319_vm1 = vcmp.lt.f32.partialorder %v191_v12, 0.0  ;;  %v446_v23 = vsel %vm318_vm0, -1.0, %v1427_v6  ;;  %v203_v41 = vld [vmem:[%s1557_s4 + $0x168] sm:$0xff]  ;;  %v204_v44 = vld [vmem:[%s1557_s4 + $0x170] sm:$0xff] }
  0x50   : > { %vm320_vm2 = vcmp.lt.f32.partialorder %v192_v13, 0.0  ;;  %v1192_v25 = vpack.c.bf16 %v445_v22, %v444_v19  ;;  %v447_v26 = vsel %vm319_vm1, -1.0, %v1427_v6  ;;  %vm321_vm3 = vcmp.lt.f32.partialorder %v193_v17, 0.0  ;;  %v205_v48 = vld [vmem:[%s1557_s4 + $0x178] sm:$0xff]  ;;  %v206_v49 = vld [vmem:[%s1557_s4 + $0x180] sm:$0xff]  ;;  %v207_v52 = vld [vmem:[%s1557_s4 + $0x188] sm:$0xff] }
  0x51   : > { %940 = vst [vmem:[%s1582_s18 + $0x70] sm:$0xff] %v1191_v18  ;;  %v448_v27 = vsel %vm320_vm2, -1.0, %v1427_v6  ;;  %v1193_v30 = vpack.c.bf16 %v447_v26, %v446_v23  ;;  %v449_v31 = vsel %vm321_vm3, -1.0, %v1427_v6  ;;  %vm322_vm4 = vcmp.lt.f32.partialorder %v194_v20, 0.0  ;;  %v208_v53 = vld [vmem:[%s1557_s4 + $0x190] sm:$0xff]  ;;  %v209_v57 = vld [vmem:[%s1557_s4 + $0x198] sm:$0xff] }
  0x52   : > { %vm323_vm5 = vcmp.lt.f32.partialorder %v195_v21, 0.0  ;;  %941 = vst [vmem:[%s1582_s18 + $0x78] sm:$0xff] %v1192_v25  ;;  %v1194_v34 = vpack.c.bf16 %v449_v31, %v448_v27  ;;  %v450_v35 = vsel %vm322_vm4, -1.0, %v1427_v6  ;;  %vm324_vm6 = vcmp.lt.f32.partialorder %v196_v24, 0.0  ;;  %v210_v60 = vld [vmem:[%s1557_s4 + $0x1a0] sm:$0xff]  ;;  %v211_v61 = vld [vmem:[%s1557_s4 + $0x1a8] sm:$0xff] }
  0x53   : > { %v451_v36 = vsel %vm323_vm5, -1.0, %v1427_v6  ;;  %942 = vst [vmem:[%s1582_s18 + $0x80] sm:$0xff] %v1193_v30  ;;  %vm325_vm7 = vcmp.lt.f32.partialorder %v197_v28, 0.0  ;;  %v452_v39 = vsel %vm324_vm6, -1.0, %v1427_v6  ;;  %vm326_vm8 = vcmp.lt.f32.partialorder %v198_v29, 0.0  ;;  %v212_v0 = vld [vmem:[%s1557_s4 + $0x1b0] sm:$0xff] }
  0x54   : > { %v1195_v38 = vpack.c.bf16 %v451_v36, %v450_v35  ;;  %943 = vst [vmem:[%s1582_s18 + $0x88] sm:$0xff] %v1194_v34  ;;  %v453_v42 = vsel %vm325_vm7, -1.0, %v1427_v6  ;;  %vm327_vm9 = vcmp.lt.f32.partialorder %v199_v32, 0.0  ;;  %v454_v43 = vsel %vm326_vm8, -1.0, %v1427_v6  ;;  %v213_v4 = vld [vmem:[%s1557_s4 + $0x1b8] sm:$0xff]  ;;  %v214_v5 = vld [vmem:[%s1557_s4 + $0x1c0] sm:$0xff] }
  0x55   : > { %vm328_vm10 = vcmp.lt.f32.partialorder %v200_v33, 0.0  ;;  %v1196_v45 = vpack.c.bf16 %v453_v42, %v452_v39  ;;  %v455_v46 = vsel %vm327_vm9, -1.0, %v1427_v6  ;;  %vm329_vm11 = vcmp.lt.f32.partialorder %v201_v37, 0.0  ;;  %v215_v9 = vld [vmem:[%s1557_s4 + $0x1c8] sm:$0xff]  ;;  %v216_v10 = vld [vmem:[%s1557_s4 + $0x1d0] sm:$0xff]  ;;  %v217_v14 = vld [vmem:[%s1557_s4 + $0x1d8] sm:$0xff] }
  0x56   : > { %944 = vst [vmem:[%s1582_s18 + $0x90] sm:$0xff] %v1195_v38  ;;  %v456_v47 = vsel %vm328_vm10, -1.0, %v1427_v6  ;;  %v1197_v50 = vpack.c.bf16 %v455_v46, %v454_v43  ;;  %v457_v51 = vsel %vm329_vm11, -1.0, %v1427_v6  ;;  %vm330_vm12 = vcmp.lt.f32.partialorder %v202_v40, 0.0  ;;  %v218_v17 = vld [vmem:[%s1557_s4 + $0x1e0] sm:$0xff]  ;;  %v219_v18 = vld [vmem:[%s1557_s4 + $0x1e8] sm:$0xff] }
  0x57   : > { %vm331_vm13 = vcmp.lt.f32.partialorder %v203_v41, 0.0  ;;  %945 = vst [vmem:[%s1582_s18 + $0x98] sm:$0xff] %v1196_v45  ;;  %v1198_v54 = vpack.c.bf16 %v457_v51, %v456_v47  ;;  %v458_v55 = vsel %vm330_vm12, -1.0, %v1427_v6  ;;  %vm332_vm14 = vcmp.lt.f32.partialorder %v204_v44, 0.0  ;;  %v220_v21 = vld [vmem:[%s1557_s4 + $0x1f0] sm:$0xff]  ;;  %v221_v25 = vld [vmem:[%s1557_s4 + $0x1f8] sm:$0xff] }
  0x58   : > { %v459_v56 = vsel %vm331_vm13, -1.0, %v1427_v6  ;;  %946 = vst [vmem:[%s1582_s18 + $0xa0] sm:$0xff] %v1197_v50  ;;  %vm333_vm15 = vcmp.lt.f32.partialorder %v205_v48, 0.0  ;;  %v460_v59 = vsel %vm332_vm14, -1.0, %v1427_v6  ;;  %vm334_vm0 = vcmp.lt.f32.partialorder %v206_v49, 0.0  ;;  %v222_v26 = vld [vmem:[%s1557_s4 + $0x200] sm:$0xff] }
  0x59   : > { %v1199_v58 = vpack.c.bf16 %v459_v56, %v458_v55  ;;  %947 = vst [vmem:[%s1582_s18 + $0xa8] sm:$0xff] %v1198_v54  ;;  %v461_v62 = vsel %vm333_vm15, -1.0, %v1427_v6  ;;  %vm335_vm1 = vcmp.lt.f32.partialorder %v207_v52, 0.0  ;;  %v462_v63 = vsel %vm334_vm0, -1.0, %v1427_v6  ;;  %v223_v29 = vld [vmem:[%s1557_s4 + $0x208] sm:$0xff]  ;;  %v224_v30 = vld [vmem:[%s1557_s4 + $0x210] sm:$0xff] }
  0x5a   : > { %vm336_vm2 = vcmp.lt.f32.partialorder %v208_v53, 0.0  ;;  %v1200_v1 = vpack.c.bf16 %v461_v62, %v460_v59  ;;  %v463_v2 = vsel %vm335_vm1, -1.0, %v1427_v6  ;;  %vm337_vm3 = vcmp.lt.f32.partialorder %v209_v57, 0.0  ;;  %v225_v34 = vld [vmem:[%s1557_s4 + $0x218] sm:$0xff]  ;;  %v226_v37 = vld [vmem:[%s1557_s4 + $0x220] sm:$0xff]  ;;  %v227_v38 = vld [vmem:[%s1557_s4 + $0x228] sm:$0xff] }
  0x5b   : > { %948 = vst [vmem:[%s1582_s18 + $0xb0] sm:$0xff] %v1199_v58  ;;  %v464_v3 = vsel %vm336_vm2, -1.0, %v1427_v6  ;;  %v1201_v7 = vpack.c.bf16 %v463_v2, %v462_v63  ;;  %v465_v8 = vsel %vm337_vm3, -1.0, %v1427_v6  ;;  %vm338_vm4 = vcmp.lt.f32.partialorder %v210_v60, 0.0  ;;  %v228_v41 = vld [vmem:[%s1557_s4 + $0x230] sm:$0xff]  ;;  %v229_v45 = vld [vmem:[%s1557_s4 + $0x238] sm:$0xff] }
  0x5c   : > { %vm339_vm5 = vcmp.lt.f32.partialorder %v211_v61, 0.0  ;;  %949 = vst [vmem:[%s1582_s18 + $0xb8] sm:$0xff] %v1200_v1  ;;  %v1202_v11 = vpack.c.bf16 %v465_v8, %v464_v3  ;;  %v466_v12 = vsel %vm338_vm4, -1.0, %v1427_v6  ;;  %vm340_vm6 = vcmp.lt.f32.partialorder %v212_v0, 0.0  ;;  %v230_v46 = vld [vmem:[%s1557_s4 + $0x240] sm:$0xff]  ;;  %v231_v49 = vld [vmem:[%s1557_s4 + $0x248] sm:$0xff] }
  0x5d   : > { %v467_v13 = vsel %vm339_vm5, -1.0, %v1427_v6  ;;  %950 = vst [vmem:[%s1582_s18 + $0xc0] sm:$0xff] %v1201_v7  ;;  %vm341_vm7 = vcmp.lt.f32.partialorder %v213_v4, 0.0  ;;  %v468_v16 = vsel %vm340_vm6, -1.0, %v1427_v6  ;;  %vm342_vm8 = vcmp.lt.f32.partialorder %v214_v5, 0.0  ;;  %v232_v50 = vld [vmem:[%s1557_s4 + $0x250] sm:$0xff] }
  0x5e   : > { %v1203_v15 = vpack.c.bf16 %v467_v13, %v466_v12  ;;  %951 = vst [vmem:[%s1582_s18 + $0xc8] sm:$0xff] %v1202_v11  ;;  %v469_v19 = vsel %vm341_vm7, -1.0, %v1427_v6  ;;  %vm343_vm9 = vcmp.lt.f32.partialorder %v215_v9, 0.0  ;;  %v470_v20 = vsel %vm342_vm8, -1.0, %v1427_v6  ;;  %v233_v54 = vld [vmem:[%s1557_s4 + $0x258] sm:$0xff]  ;;  %v234_v57 = vld [vmem:[%s1557_s4 + $0x260] sm:$0xff] }
  0x5f   : > { %vm344_vm10 = vcmp.lt.f32.partialorder %v216_v10, 0.0  ;;  %v1204_v22 = vpack.c.bf16 %v469_v19, %v468_v16  ;;  %v471_v23 = vsel %vm343_vm9, -1.0, %v1427_v6  ;;  %vm345_vm11 = vcmp.lt.f32.partialorder %v217_v14, 0.0  ;;  %v235_v58 = vld [vmem:[%s1557_s4 + $0x268] sm:$0xff]  ;;  %v236_v61 = vld [vmem:[%s1557_s4 + $0x270] sm:$0xff]  ;;  %v237_v1 = vld [vmem:[%s1557_s4 + $0x278] sm:$0xff] }
  0x60   : > { %952 = vst [vmem:[%s1582_s18 + $0xd0] sm:$0xff] %v1203_v15  ;;  %v472_v24 = vsel %vm344_vm10, -1.0, %v1427_v6  ;;  %v1205_v27 = vpack.c.bf16 %v471_v23, %v470_v20  ;;  %v473_v28 = vsel %vm345_vm11, -1.0, %v1427_v6  ;;  %vm346_vm12 = vcmp.lt.f32.partialorder %v218_v17, 0.0  ;;  %v238_v2 = vld [vmem:[%s1557_s4 + $0x280] sm:$0xff]  ;;  %v239_v5 = vld [vmem:[%s1557_s4 + $0x288] sm:$0xff] }
  0x61   : > { %vm347_vm13 = vcmp.lt.f32.partialorder %v219_v18, 0.0  ;;  %953 = vst [vmem:[%s1582_s18 + $0xd8] sm:$0xff] %v1204_v22  ;;  %v1206_v31 = vpack.c.bf16 %v473_v28, %v472_v24  ;;  %v474_v32 = vsel %vm346_vm12, -1.0, %v1427_v6  ;;  %vm348_vm14 = vcmp.lt.f32.partialorder %v220_v21, 0.0  ;;  %v240_v7 = vld [vmem:[%s1557_s4 + $0x290] sm:$0xff]  ;;  %v241_v11 = vld [vmem:[%s1557_s4 + $0x298] sm:$0xff] }
  0x62   : > { %v475_v33 = vsel %vm347_vm13, -1.0, %v1427_v6  ;;  %954 = vst [vmem:[%s1582_s18 + $0xe0] sm:$0xff] %v1205_v27  ;;  %vm349_vm15 = vcmp.lt.f32.partialorder %v221_v25, 0.0  ;;  %v476_v36 = vsel %vm348_vm14, -1.0, %v1427_v6  ;;  %vm350_vm0 = vcmp.lt.f32.partialorder %v222_v26, 0.0  ;;  %v242_v14 = vld [vmem:[%s1557_s4 + $0x2a0] sm:$0xff] }
  0x63   : > { %v1207_v35 = vpack.c.bf16 %v475_v33, %v474_v32  ;;  %955 = vst [vmem:[%s1582_s18 + $0xe8] sm:$0xff] %v1206_v31  ;;  %v477_v39 = vsel %vm349_vm15, -1.0, %v1427_v6  ;;  %vm351_vm1 = vcmp.lt.f32.partialorder %v223_v29, 0.0  ;;  %v478_v40 = vsel %vm350_vm0, -1.0, %v1427_v6  ;;  %v243_v15 = vld [vmem:[%s1557_s4 + $0x2a8] sm:$0xff]  ;;  %v244_v18 = vld [vmem:[%s1557_s4 + $0x2b0] sm:$0xff] }
  0x64   : > { %vm352_vm2 = vcmp.lt.f32.partialorder %v224_v30, 0.0  ;;  %v1208_v42 = vpack.c.bf16 %v477_v39, %v476_v36  ;;  %v479_v43 = vsel %vm351_vm1, -1.0, %v1427_v6  ;;  %vm353_vm3 = vcmp.lt.f32.partialorder %v225_v34, 0.0  ;;  %v245_v22 = vld [vmem:[%s1557_s4 + $0x2b8] sm:$0xff]  ;;  %v246_v23 = vld [vmem:[%s1557_s4 + $0x2c0] sm:$0xff]  ;;  %v247_v26 = vld [vmem:[%s1557_s4 + $0x2c8] sm:$0xff] }
  0x65   : > { %956 = vst [vmem:[%s1582_s18 + $0xf0] sm:$0xff] %v1207_v35  ;;  %v480_v44 = vsel %vm352_vm2, -1.0, %v1427_v6  ;;  %v1209_v47 = vpack.c.bf16 %v479_v43, %v478_v40  ;;  %v481_v48 = vsel %vm353_vm3, -1.0, %v1427_v6  ;;  %vm354_vm4 = vcmp.lt.f32.partialorder %v226_v37, 0.0  ;;  %v248_v27 = vld [vmem:[%s1557_s4 + $0x2d0] sm:$0xff]  ;;  %v249_v31 = vld [vmem:[%s1557_s4 + $0x2d8] sm:$0xff] }
  0x66   : > { %vm355_vm5 = vcmp.lt.f32.partialorder %v227_v38, 0.0  ;;  %957 = vst [vmem:[%s1582_s18 + $0xf8] sm:$0xff] %v1208_v42  ;;  %v1210_v51 = vpack.c.bf16 %v481_v48, %v480_v44  ;;  %v482_v52 = vsel %vm354_vm4, -1.0, %v1427_v6  ;;  %vm356_vm6 = vcmp.lt.f32.partialorder %v228_v41, 0.0  ;;  %v250_v34 = vld [vmem:[%s1557_s4 + $0x2e0] sm:$0xff]  ;;  %v251_v35 = vld [vmem:[%s1557_s4 + $0x2e8] sm:$0xff] }
  0x67   : > { %v483_v53 = vsel %vm355_vm5, -1.0, %v1427_v6  ;;  %958 = vst [vmem:[%s1582_s18 + $0x100] sm:$0xff] %v1209_v47  ;;  %vm357_vm7 = vcmp.lt.f32.partialorder %v229_v45, 0.0  ;;  %v484_v56 = vsel %vm356_vm6, -1.0, %v1427_v6  ;;  %vm358_vm8 = vcmp.lt.f32.partialorder %v230_v46, 0.0  ;;  %v252_v38 = vld [vmem:[%s1557_s4 + $0x2f0] sm:$0xff] }
  0x68   : > { %v1211_v55 = vpack.c.bf16 %v483_v53, %v482_v52  ;;  %959 = vst [vmem:[%s1582_s18 + $0x108] sm:$0xff] %v1210_v51  ;;  %v485_v59 = vsel %vm357_vm7, -1.0, %v1427_v6  ;;  %vm359_vm9 = vcmp.lt.f32.partialorder %v231_v49, 0.0  ;;  %v486_v60 = vsel %vm358_vm8, -1.0, %v1427_v6  ;;  %v253_v42 = vld [vmem:[%s1557_s4 + $0x2f8] sm:$0xff]  ;;  %v254_v43 = vld [vmem:[%s1557_s4 + $0x300] sm:$0xff] }
  0x69   : > { %vm360_vm10 = vcmp.lt.f32.partialorder %v232_v50, 0.0  ;;  %v1212_v62 = vpack.c.bf16 %v485_v59, %v484_v56  ;;  %v487_v63 = vsel %vm359_vm9, -1.0, %v1427_v6  ;;  %vm361_vm11 = vcmp.lt.f32.partialorder %v233_v54, 0.0  ;;  %v255_v46 = vld [vmem:[%s1557_s4 + $0x308] sm:$0xff]  ;;  %v256_v47 = vld [vmem:[%s1557_s4 + $0x310] sm:$0xff]  ;;  %v257_v51 = vld [vmem:[%s1557_s4 + $0x318] sm:$0xff] }
  0x6a   : > { %960 = vst [vmem:[%s1582_s18 + $0x110] sm:$0xff] %v1211_v55  ;;  %v488_v0 = vsel %vm360_vm10, -1.0, %v1427_v6  ;;  %v1213_v3 = vpack.c.bf16 %v487_v63, %v486_v60  ;;  %v489_v4 = vsel %vm361_vm11, -1.0, %v1427_v6  ;;  %vm362_vm12 = vcmp.lt.f32.partialorder %v234_v57, 0.0  ;;  %v258_v54 = vld [vmem:[%s1557_s4 + $0x320] sm:$0xff]  ;;  %v259_v55 = vld [vmem:[%s1557_s4 + $0x328] sm:$0xff] }
  0x6b   : > { %vm363_vm13 = vcmp.lt.f32.partialorder %v235_v58, 0.0  ;;  %961 = vst [vmem:[%s1582_s18 + $0x118] sm:$0xff] %v1212_v62  ;;  %v1214_v8 = vpack.c.bf16 %v489_v4, %v488_v0  ;;  %v490_v9 = vsel %vm362_vm12, -1.0, %v1427_v6  ;;  %vm364_vm14 = vcmp.lt.f32.partialorder %v236_v61, 0.0  ;;  %v260_v58 = vld [vmem:[%s1557_s4 + $0x330] sm:$0xff]  ;;  %v261_v62 = vld [vmem:[%s1557_s4 + $0x338] sm:$0xff] }
  0x6c   : > { %v491_v10 = vsel %vm363_vm13, -1.0, %v1427_v6  ;;  %962 = vst [vmem:[%s1582_s18 + $0x120] sm:$0xff] %v1213_v3  ;;  %vm365_vm15 = vcmp.lt.f32.partialorder %v237_v1, 0.0  ;;  %v492_v13 = vsel %vm364_vm14, -1.0, %v1427_v6  ;;  %vm366_vm0 = vcmp.lt.f32.partialorder %v238_v2, 0.0  ;;  %v262_v63 = vld [vmem:[%s1557_s4 + $0x340] sm:$0xff] }
  0x6d   : > { %v1215_v12 = vpack.c.bf16 %v491_v10, %v490_v9  ;;  %963 = vst [vmem:[%s1582_s18 + $0x128] sm:$0xff] %v1214_v8  ;;  %v493_v16 = vsel %vm365_vm15, -1.0, %v1427_v6  ;;  %vm367_vm1 = vcmp.lt.f32.partialorder %v239_v5, 0.0  ;;  %v494_v17 = vsel %vm366_vm0, -1.0, %v1427_v6  ;;  %v263_v2 = vld [vmem:[%s1557_s4 + $0x348] sm:$0xff]  ;;  %v264_v3 = vld [vmem:[%s1557_s4 + $0x350] sm:$0xff] }
  0x6e   : > { %vm368_vm2 = vcmp.lt.f32.partialorder %v240_v7, 0.0  ;;  %v1216_v19 = vpack.c.bf16 %v493_v16, %v492_v13  ;;  %v495_v20 = vsel %vm367_vm1, -1.0, %v1427_v6  ;;  %vm369_vm3 = vcmp.lt.f32.partialorder %v241_v11, 0.0  ;;  %v265_v8 = vld [vmem:[%s1557_s4 + $0x358] sm:$0xff]  ;;  %v266_v11 = vld [vmem:[%s1557_s4 + $0x360] sm:$0xff]  ;;  %s1007_s30 = sshll.u32 %s1582_s18, 4  ;;  %s1891_s30 = int_to_ptr.vmem [resolvable:$true] %s1007_s30 }
  0x6f   : > { %964 = vst [vmem:[%s1582_s18 + $0x130] sm:$0xff] %v1215_v12  ;;  %v496_v21 = vsel %vm368_vm2, -1.0, %v1427_v6  ;;  %v1217_v24 = vpack.c.bf16 %v495_v20, %v494_v17  ;;  %v497_v25 = vsel %vm369_vm3, -1.0, %v1427_v6  ;;  %vm370_vm4 = vcmp.lt.f32.partialorder %v242_v14, 0.0  ;;  %v267_v12 = vld [vmem:[%s1557_s4 + $0x368] sm:$0xff]  ;;  %v270_v20 = vld [vmem:[%s1557_s4 + $0x380] sm:$0xff] }
  0x70   : > { %vm371_vm5 = vcmp.lt.f32.partialorder %v243_v15, 0.0  ;;  %965 = vst [vmem:[%s1582_s18 + $0x138] sm:$0xff] %v1216_v19  ;;  %v1218_v28 = vpack.c.bf16 %v497_v25, %v496_v21  ;;  %v498_v29 = vsel %vm370_vm4, -1.0, %v1427_v6  ;;  %vm372_vm6 = vcmp.lt.f32.partialorder %v244_v18, 0.0  ;;  %v268_v15 = vld [vmem:[%s1557_s4 + $0x370] sm:$0xff]  ;;  %v269_v19 = vld [vmem:[%s1557_s4 + $0x378] sm:$0xff] }
  0x71   : > { %v499_v30 = vsel %vm371_vm5, -1.0, %v1427_v6  ;;  %966 = vst [vmem:[%s1582_s18 + $0x140] sm:$0xff] %v1217_v24  ;;  %vm373_vm7 = vcmp.lt.f32.partialorder %v245_v22, 0.0  ;;  %v500_v33 = vsel %vm372_vm6, -1.0, %v1427_v6  ;;  %vm374_vm8 = vcmp.lt.f32.partialorder %v246_v23, 0.0  ;;  %v271_v23 = vld [vmem:[%s1557_s4 + $0x388] sm:$0xff] }
  0x72   : > { %v1219_v32 = vpack.c.bf16 %v499_v30, %v498_v29  ;;  %967 = vst [vmem:[%s1582_s18 + $0x148] sm:$0xff] %v1218_v28  ;;  %v501_v36 = vsel %vm373_vm7, -1.0, %v1427_v6  ;;  %vm375_vm9 = vcmp.lt.f32.partialorder %v247_v26, 0.0  ;;  %v502_v37 = vsel %vm374_vm8, -1.0, %v1427_v6  ;;  %v272_v24 = vld [vmem:[%s1557_s4 + $0x390] sm:$0xff]  ;;  %v273_v28 = vld [vmem:[%s1557_s4 + $0x398] sm:$0xff] }
  0x73   : > { %vm376_vm10 = vcmp.lt.f32.partialorder %v248_v27, 0.0  ;;  %v1220_v39 = vpack.c.bf16 %v501_v36, %v500_v33  ;;  %v503_v40 = vsel %vm375_vm9, -1.0, %v1427_v6  ;;  %vm377_vm11 = vcmp.lt.f32.partialorder %v249_v31, 0.0  ;;  %v274_v31 = vld [vmem:[%s1557_s4 + $0x3a0] sm:$0xff]  ;;  %s991_s12 = scalar_lea.sflag [#allocation4], %s1553_s26  ;;  %s1340_s13 = scalar_lea.vmem %s1891_s30, 8192 }
  0x74   : > { %968 = vst [vmem:[%s1582_s18 + $0x150] sm:$0xff] %v1219_v32  ;;  %v504_v41 = vsel %vm376_vm10, -1.0, %v1427_v6  ;;  %v1221_v44 = vpack.c.bf16 %v503_v40, %v502_v37  ;;  %v505_v45 = vsel %vm377_vm11, -1.0, %v1427_v6  ;;  %vm378_vm12 = vcmp.lt.f32.partialorder %v250_v34, 0.0  ;;  %v275_v32 = vld [vmem:[%s1557_s4 + $0x3a8] sm:$0xff]  ;;  %v278_v40 = vld [vmem:[%s1557_s4 + $0x3c0] sm:$0xff]  ;;  %p1341_p8 = scmp.ne.s32.totalorder %s1891_s30, %s1340_s13 }
  0x75   : > { %vm379_vm13 = vcmp.lt.f32.partialorder %v251_v35, 0.0  ;;  %969 = vst [vmem:[%s1582_s18 + $0x158] sm:$0xff] %v1220_v39  ;;  %v1222_v48 = vpack.c.bf16 %v505_v45, %v504_v41  ;;  %v506_v49 = vsel %vm378_vm12, -1.0, %v1427_v6  ;;  %vm380_vm14 = vcmp.lt.f32.partialorder %v252_v38, 0.0  ;;  %v276_v35 = vld [vmem:[%s1557_s4 + $0x3b0] sm:$0xff]  ;;  %v277_v39 = vld [vmem:[%s1557_s4 + $0x3b8] sm:$0xff] }
  0x76   : > { %v507_v50 = vsel %vm379_vm13, -1.0, %v1427_v6  ;;  %970 = vst [vmem:[%s1582_s18 + $0x160] sm:$0xff] %v1221_v44  ;;  %vm381_vm15 = vcmp.lt.f32.partialorder %v253_v42, 0.0  ;;  %v508_v53 = vsel %vm380_vm14, -1.0, %v1427_v6  ;;  %vm382_vm0 = vcmp.lt.f32.partialorder %v254_v43, 0.0  ;;  %v279_v43 = vld [vmem:[%s1557_s4 + $0x3c8] sm:$0xff] }
  0x77   : > { %v1223_v52 = vpack.c.bf16 %v507_v50, %v506_v49  ;;  %971 = vst [vmem:[%s1582_s18 + $0x168] sm:$0xff] %v1222_v48  ;;  %v509_v56 = vsel %vm381_vm15, -1.0, %v1427_v6  ;;  %vm383_vm1 = vcmp.lt.f32.partialorder %v255_v46, 0.0  ;;  %v510_v57 = vsel %vm382_vm0, -1.0, %v1427_v6  ;;  %v280_v44 = vld [vmem:[%s1557_s4 + $0x3d0] sm:$0xff]  ;;  %v281_v48 = vld [vmem:[%s1557_s4 + $0x3d8] sm:$0xff] }
  0x78   : > { %vm384_vm2 = vcmp.lt.f32.partialorder %v256_v47, 0.0  ;;  %v1224_v59 = vpack.c.bf16 %v509_v56, %v508_v53  ;;  %v511_v60 = vsel %vm383_vm1, -1.0, %v1427_v6  ;;  %vm385_vm3 = vcmp.lt.f32.partialorder %v257_v51, 0.0  ;;  %v282_v51 = vld [vmem:[%s1557_s4 + $0x3e0] sm:$0xff]  ;;  %p1951_p9 = scmp.ne.s32.totalorder %s1947_s19, 0  ;;  %s1428_s15 = smov [#allocation5]  }
  0x79   : > { %972 = vst [vmem:[%s1582_s18 + $0x170] sm:$0xff] %v1223_v52  ;;  %v512_v61 = vsel %vm384_vm2, -1.0, %v1427_v6  ;;  %v1225_v0 = vpack.c.bf16 %v511_v60, %v510_v57  ;;  %v513_v1 = vsel %vm385_vm3, -1.0, %v1427_v6  ;;  %vm386_vm4 = vcmp.lt.f32.partialorder %v258_v54, 0.0  ;;  %v283_v52 = vld [vmem:[%s1557_s4 + $0x3e8] sm:$0xff]  ;;  %s1344_s16 = sshll.u32 %s1428_s15, 4  ;;  %s1345_s16 = int_to_ptr.vmem [resolvable:$false] %s1344_s16 }
  0x7a   : > { %vm387_vm5 = vcmp.lt.f32.partialorder %v259_v55, 0.0  ;;  %973 = vst [vmem:[%s1582_s18 + $0x178] sm:$0xff] %v1224_v59  ;;  %v1226_v4 = vpack.c.bf16 %v513_v1, %v512_v61  ;;  %v514_v5 = vsel %vm386_vm4, -1.0, %v1427_v6  ;;  %vm388_vm6 = vcmp.lt.f32.partialorder %v260_v58, 0.0  ;;  %v284_v55 = vld [vmem:[%s1557_s4 + $0x3f0] sm:$0xff]  ;;  %v285_v59 = vld [vmem:[%s1557_s4 + $0x3f8] sm:$0xff]  ;;  %p1342_p11 = pnand %p1341_p8, %p1951_p9  ;;  %p1347_p6 = scmp.lt.s32.totalorder %s1891_s30, %s1345_s16 }
  0x7b   : > { %v515_v7 = vsel %vm387_vm5, -1.0, %v1427_v6  ;;  %974 = vst [vmem:[%s1582_s18 + $0x180] sm:$0xff] %v1225_v0  ;;  %vm389_vm7 = vcmp.lt.f32.partialorder %v261_v62, 0.0  ;;  %v516_v10 = vsel %vm388_vm6, -1.0, %v1427_v6  ;;  %vm390_vm8 = vcmp.lt.f32.partialorder %v262_v63, 0.0  ;;  %s1346_s17 = scalar_lea.vmem %s1345_s16, 16384 }
  0x7c   : > { %v1227_v9 = vpack.c.bf16 %v515_v7, %v514_v5  ;;  %975 = vst [vmem:[%s1582_s18 + $0x188] sm:$0xff] %v1226_v4  ;;  %v517_v13 = vsel %vm389_vm7, -1.0, %v1427_v6  ;;  %vm391_vm9 = vcmp.lt.f32.partialorder %v263_v2, 0.0  ;;  %v518_v14 = vsel %vm390_vm8, -1.0, %v1427_v6  ;;  %p1343_p0 = pneg %p1342_p11  ;;  %p1348_p13 = scmp.lt.s32.totalorder %s1346_s17, %s1340_s13 }
  0x7d   : > { %vm392_vm10 = vcmp.lt.f32.partialorder %v264_v3, 0.0  ;;  %v1228_v16 = vpack.c.bf16 %v517_v13, %v516_v10  ;;  %v519_v17 = vsel %vm391_vm9, -1.0, %v1427_v6  ;;  %vm393_vm11 = vcmp.lt.f32.partialorder %v265_v8, 0.0 }
  0x7e   : > { %976 = vst [vmem:[%s1582_s18 + $0x190] sm:$0xff] %v1227_v9  ;;  %v520_v18 = vsel %vm392_vm10, -1.0, %v1427_v6  ;;  %v1229_v21 = vpack.c.bf16 %v519_v17, %v518_v14  ;;  %v521_v22 = vsel %vm393_vm11, -1.0, %v1427_v6  ;;  %vm394_vm12 = vcmp.lt.f32.partialorder %v266_v11, 0.0  ;;  %p1349_p2 = por %p1348_p13, %p1347_p6 }
  0x7f   : > { %vm395_vm13 = vcmp.lt.f32.partialorder %v267_v12, 0.0  ;;  %977 = vst [vmem:[%s1582_s18 + $0x198] sm:$0xff] %v1228_v16  ;;  %v1230_v25 = vpack.c.bf16 %v521_v22, %v520_v18  ;;  %v522_v26 = vsel %vm394_vm12, -1.0, %v1427_v6  ;;  %vm396_vm14 = vcmp.lt.f32.partialorder %v268_v15, 0.0 }
  0x80   : > { %v523_v27 = vsel %vm395_vm13, -1.0, %v1427_v6  ;;  %978 = vst [vmem:[%s1582_s18 + $0x1a0] sm:$0xff] %v1229_v21  ;;  %vm397_vm15 = vcmp.lt.f32.partialorder %v269_v19, 0.0  ;;  %v524_v30 = vsel %vm396_vm14, -1.0, %v1427_v6  ;;  %vm398_vm0 = vcmp.lt.f32.partialorder %v270_v20, 0.0  ;;  %p1350_p5 = pnand %p1349_p2, %p1343_p0 }
  0x81   : > { %v1231_v29 = vpack.c.bf16 %v523_v27, %v522_v26  ;;  %979 = vst [vmem:[%s1582_s18 + $0x1a8] sm:$0xff] %v1230_v25  ;;  %v525_v33 = vsel %vm397_vm15, -1.0, %v1427_v6  ;;  %vm399_vm1 = vcmp.lt.f32.partialorder %v271_v23, 0.0  ;;  %v526_v34 = vsel %vm398_vm0, -1.0, %v1427_v6 }
  0x82   : > { %vm400_vm2 = vcmp.lt.f32.partialorder %v272_v24, 0.0  ;;  %v1232_v36 = vpack.c.bf16 %v525_v33, %v524_v30  ;;  %v527_v37 = vsel %vm399_vm1, -1.0, %v1427_v6  ;;  %vm401_vm3 = vcmp.lt.f32.partialorder %v273_v28, 0.0 }
  0x83   : > { %980 = vst [vmem:[%s1582_s18 + $0x1b0] sm:$0xff] %v1231_v29  ;;  %v528_v38 = vsel %vm400_vm2, -1.0, %v1427_v6  ;;  %v1233_v41 = vpack.c.bf16 %v527_v37, %v526_v34  ;;  %v529_v42 = vsel %vm401_vm3, -1.0, %v1427_v6  ;;  %vm402_vm4 = vcmp.lt.f32.partialorder %v274_v31, 0.0 }
  0x84   : > { %vm403_vm5 = vcmp.lt.f32.partialorder %v275_v32, 0.0  ;;  %981 = vst [vmem:[%s1582_s18 + $0x1b8] sm:$0xff] %v1232_v36  ;;  %v1234_v45 = vpack.c.bf16 %v529_v42, %v528_v38  ;;  %v530_v46 = vsel %vm402_vm4, -1.0, %v1427_v6  ;;  %vm404_vm6 = vcmp.lt.f32.partialorder %v276_v35, 0.0 }
  0x85   : > { %v531_v47 = vsel %vm403_vm5, -1.0, %v1427_v6  ;;  %982 = vst [vmem:[%s1582_s18 + $0x1c0] sm:$0xff] %v1233_v41  ;;  %vm405_vm7 = vcmp.lt.f32.partialorder %v277_v39, 0.0  ;;  %v532_v50 = vsel %vm404_vm6, -1.0, %v1427_v6  ;;  %vm406_vm8 = vcmp.lt.f32.partialorder %v278_v40, 0.0 }
  0x86   : > { %v1235_v49 = vpack.c.bf16 %v531_v47, %v530_v46  ;;  %983 = vst [vmem:[%s1582_s18 + $0x1c8] sm:$0xff] %v1234_v45  ;;  %v533_v53 = vsel %vm405_vm7, -1.0, %v1427_v6  ;;  %vm407_vm9 = vcmp.lt.f32.partialorder %v279_v43, 0.0  ;;  %v534_v54 = vsel %vm406_vm8, -1.0, %v1427_v6 }
  0x87   : > { %vm408_vm10 = vcmp.lt.f32.partialorder %v280_v44, 0.0  ;;  %v1236_v56 = vpack.c.bf16 %v533_v53, %v532_v50  ;;  %v535_v57 = vsel %vm407_vm9, -1.0, %v1427_v6  ;;  %vm409_vm11 = vcmp.lt.f32.partialorder %v281_v48, 0.0 }
  0x88   : > { %984 = vst [vmem:[%s1582_s18 + $0x1d0] sm:$0xff] %v1235_v49  ;;  %v536_v58 = vsel %vm408_vm10, -1.0, %v1427_v6  ;;  %v1237_v60 = vpack.c.bf16 %v535_v57, %v534_v54  ;;  %v537_v61 = vsel %vm409_vm11, -1.0, %v1427_v6  ;;  %vm410_vm12 = vcmp.lt.f32.partialorder %v282_v51, 0.0 }
  0x89   : > { %vm411_vm13 = vcmp.lt.f32.partialorder %v283_v52, 0.0  ;;  %985 = vst [vmem:[%s1582_s18 + $0x1d8] sm:$0xff] %v1236_v56  ;;  %v1238_v62 = vpack.c.bf16 %v537_v61, %v536_v58  ;;  %v538_v63 = vsel %vm410_vm12, -1.0, %v1427_v6  ;;  %vm412_vm14 = vcmp.lt.f32.partialorder %v284_v55, 0.0 }
  0x8a   : > { %v539_v0 = vsel %vm411_vm13, -1.0, %v1427_v6  ;;  %986 = vst [vmem:[%s1582_s18 + $0x1e0] sm:$0xff] %v1237_v60  ;;  %vm413_vm15 = vcmp.lt.f32.partialorder %v285_v59, 0.0  ;;  %v540_v2 = vsel %vm412_vm14, -1.0, %v1427_v6 }
  0x8b   : > { %v1239_v1 = vpack.c.bf16 %v539_v0, %v538_v63  ;;  %987 = vst [vmem:[%s1582_s18 + $0x1e8] sm:$0xff] %v1238_v62  ;;  %v541_v3 = vsel %vm413_vm15, -1.0, %v1427_v6 }
  0x8c   : > { %v1240_v4 = vpack.c.bf16 %v541_v3, %v540_v2 }
  0x8d   : > { %988 = vst [vmem:[%s1582_s18 + $0x1f0] sm:$0xff] %v1239_v1 }
  0x8e   : > { %989 = vst [vmem:[%s1582_s18 + $0x1f8] sm:$0xff] %v1240_v4 }
  0x8f   : > { %1353 = shalt.err (!%p1350_p5)
}
  0x90   : > { %s1354_s22 = scalar_lea.hbm %s1889_s5, 8192  ;;  %s1358_s25 = scalar_lea.hbm %s1943_s1, 16384 }
  0x91   : > { %p1355_p4 = scmp.ne.s32.totalorder %s1889_s5, %s1354_s22  ;;  %p1359_p12 = scmp.lt.u32.totalorder %s1889_s5, %s1943_s1 }
  0x92   : > { %p1360_p1 = scmp.lt.u32.totalorder %s1358_s25, %s1354_s22  ;;  %p1362_p8 = scmp.lt.u32.totalorder %s1354_s22, %s1889_s5 }
  0x93   : > { %p1356_p7 = pnand %p1355_p4, %p1951_p9 }
  0x94   : > { %p1361_p3 = por %p1360_p1, %p1359_p12 }
  0x95   : > { %p1357_p10 = pneg %p1356_p7 }
  0x96   : > { %p1363_p11 = por %p1362_p8, %p1361_p3 }
  0x98   : > { %p1364_p0 = pnand %p1363_p11, %p1357_p10 }
  0x9a   : > { %1367 = shalt.err (!%p1364_p0)
}
  0x9b   : > { %s1429_s4 = smov 256   ;;  %s1430_s27 = smov 16  }
  0x9c   : > { %1245 = dma.vmem_to_hbm [thread:$0]  (%p1951_p9), %s1891_s30, 8192, %s1889_s5, %s991_s12, %s1429_s4, %s1429_s4, %s1430_s27  }
  0x9d PF: > { %s1022_s18 = sand.u32 1, %s1402_s6   ;;  %p1952_p6 = scmp.ne.s32.totalorder %s1948_s21, 0 }
  0x9e   : > { %p1953_p13 = scmp.ge.s32.totalorder %s1422_s11, 2  ;;  %s1023_s29 = scalar_lea.sflag [#allocation4], %s1022_s18 }
  0xa0   : > { %p1252_p2 = pnand %p1953_p13, %p1952_p6 }
  0xa2   : > { %1397 = dma.done.wait (!%p1252_p2), %s1023_s29, 8192  }
  0xa3   : > { %1399 = vsyncadd (!%p1252_p2), %s1023_s29, 4294959104  ;;  %s17_s11 = sadd.s32 1, %s1422_s11   ;;  %s1954_s6 = smov %s1406_s7 }
  0xa4   : > { %p14_p5 = scmp.ge.s32.totalorder %s17_s11, 4   ;;  %s1955_s7 = smov %s1410_s8 }
  0xa5   : > { %s1956_s8 = smov %s1497_s20  ;;  %s1957_s9 = smov %s1418_s10 }
  0xa6   : > { %s1958_s10 = smov %s1960_s14  ;;  %16 = sbr.rel (!%p14_p5) target bundleno = 6 (0x6), region = 69 }
  0xad   :  { %1028 = vsyncpa [#allocation3], 1 }
  0xae   :  { %1030 = vsyncpa [#allocation3 + $0x1], 1 }
  0xaf   :  { %1031 = vsyncpa [#allocation4], 1 }
  0xb0   :  { %1033 = vsyncpa [#allocation4 + $0x1], 1 }

</bundles_post_ra>
